<compile_context>
chip_gen: v7x
topology: tpu7x:2x2x1
jax: 0.10.0
libtpu: 0.0.40
codegen_flags: <defaults>
</compile_context>

<pallas_src>
from functools import partial

import jax
import jax.numpy as jnp
from jax.experimental import pallas as pl
from jax.experimental.pallas import tpu as pltpu


def _gelu_tanh(x):
    # GELU, tanh approximation, in f32.
    return 0.5 * x * (1.0 + jnp.tanh(0.7978845608028654 * (x + 0.044715 * x * x * x)))


def _grouped_ffn_kernel(tile_expert_ref,        # SMEM (ng,) i32 (scalar prefetch; used by index_maps)
                        x_ref,                  # (tile_m, H) bf16  — this step's routed tokens
                        w1_ref, b1_ref,         # (1, H, I) bf16, (1, 1, I) f32
                        w2_ref, b2_ref,         # (1, I, H) bf16, (1, 1, H) f32
                        out_ref):               # (tile_m, H) f32
    del tile_expert_ref                         # consumed only by the BlockSpec index_maps
    # One expert, one tile: two MXU matmuls (bf16 in, f32 accumulate), one writeback.
    h = jnp.dot(x_ref[...], w1_ref[0], preferred_element_type=jnp.float32) + b1_ref[0]
    h = _gelu_tanh(h)
    y = jnp.dot(h.astype(jnp.bfloat16), w2_ref[0],
                preferred_element_type=jnp.float32) + b2_ref[0]
    out_ref[...] = y


def expert_ffn_forward(x, params, *, tile_m=256):
    """x: (B, S, H) f32 -> (expert_outputs, router_probs, router_logits)."""
    B, S, H = x.shape
    E = params["wr"].shape[0]
    I = params["w1"].shape[1]
    T = B * S
    assert tile_m % 8 == 0
    xf = x.reshape(T, H)

    # ---- router in plain XLA (tiny matmul; exact f32 softmax / top-1) ---------
    hp = jax.lax.Precision.HIGHEST
    logits = jnp.dot(xf, params["wr"].T, precision=hp) + params["br"][0]      # (T, E)
    probs = jax.nn.softmax(logits, axis=-1)
    idx = jnp.argmax(probs, axis=-1).astype(jnp.int32)   # first max == torch.topk(1)

    # ---- group tokens by expert into a tile_m-aligned layout -------------------
    # Static upper bound on the number of token tiles: floor(T/m) + one partial
    # tile per expert. Trailing unused tiles compute on zero rows and their
    # output is never gathered back.
    ng = pl.cdiv(T, tile_m) + E
    Tg = ng * tile_m

    onehot = (idx[:, None] == jnp.arange(E, dtype=jnp.int32)[None, :]).astype(jnp.int32)  # (T,E)
    counts = onehot.sum(axis=0)                                   # (E,) tokens per expert
    tiles_per_e = (counts + tile_m - 1) // tile_m                 # (E,)
    tile_ends = jnp.cumsum(tiles_per_e)                           # (E,)
    tile_starts = tile_ends - tiles_per_e                         # (E,) first tile id per expert

    # rank of each token within its expert group (exclusive running count)
    rank = jnp.take_along_axis(jnp.cumsum(onehot, axis=0) - onehot, idx[:, None], axis=1)[:, 0]
    dest = tile_m * tile_starts[idx] + rank                       # (T,) row in grouped layout

    # expert id per grid step (1-D SMEM scalar prefetch; unused tail clamps to E-1)
    t_ids = jnp.arange(ng, dtype=jnp.int32)
    tile_expert = jnp.minimum(
        jnp.sum((t_ids[:, None] >= tile_ends[None, :]).astype(jnp.int32), axis=1),
        E - 1,
    ).astype(jnp.int32)

    # scatter tokens (bf16) into the grouped layout; padding rows stay zero
    x_grouped = jnp.zeros((Tg, H), jnp.bfloat16).at[dest].set(xf.astype(jnp.bfloat16))

    # pre-transposed bf16 expert weights: each in-kernel dot is a pure MXU push
    w1t = jnp.transpose(params["w1"], (0, 2, 1)).astype(jnp.bfloat16)         # (E, H, I)
    w2t = jnp.transpose(params["w2"], (0, 2, 1)).astype(jnp.bfloat16)         # (E, I, H)
    b1 = params["b1"]                                                         # (E, 1, I) f32
    b2 = params["b2"]                                                         # (E, 1, H) f32

    # ---- VMEM budget from actual block sizes, capped below physical VMEM ------
    block_bytes = (tile_m * H * 2          # x tile (bf16)
                   + tile_m * H * 4        # out tile (f32)
                   + H * I * 2 + I * H * 2  # one expert's w1ᵀ + w2ᵀ (bf16)
                   + I * 4 + H * 4)        # biases (f32)
    try:
        vmem_phys = pltpu.get_tpu_info().vmem_capacity_bytes      # 128 MiB v5e/v6e, 64 MiB v7x
    except Exception:
        vmem_phys = 128 << 20
    vmem_limit = int(min(max(2 * block_bytes + (8 << 20), 32 << 20), 0.75 * vmem_phys))

    out_grouped = pl.pallas_call(
        _grouped_ffn_kernel,
        out_shape=jax.ShapeDtypeStruct((Tg, H), jnp.float32),
        grid_spec=pltpu.PrefetchScalarGridSpec(
            num_scalar_prefetch=1,
            grid=(ng,),
            in_specs=[
                # grouped token tile for this step
                pl.BlockSpec((tile_m, H), lambda t, te: (t, 0)),
                # one expert slab per step, selected by the prefetched tile->expert map;
                # consecutive tiles of the same expert keep the slab resident (no re-DMA)
                pl.BlockSpec((1, H, I), lambda t, te: (te[t], 0, 0)),
                pl.BlockSpec((1, 1, I), lambda t, te: (te[t], 0, 0)),
                pl.BlockSpec((1, I, H), lambda t, te: (te[t], 0, 0)),
                pl.BlockSpec((1, 1, H), lambda t, te: (te[t], 0, 0)),
            ],
            out_specs=pl.BlockSpec((tile_m, H), lambda t, te: (t, 0)),
        ),
        compiler_params=pltpu.CompilerParams(
            # the single grid axis carries the weight-streaming order (per-expert
            # slabs revisited across consecutive steps), so keep it sequential
            dimension_semantics=("arbitrary",),
            vmem_limit_bytes=vmem_limit,
        ),
    )(tile_expert, x_grouped, w1t, b1, w2t, b2)

    out = jnp.take(out_grouped, dest, axis=0).reshape(B, S, H)
    return out, probs.reshape(B, S, E), logits.reshape(B, S, E)


def init_params(key, num_experts, hidden, inter):
    ks = jax.random.split(key, 7)
    bound = 1.0 / jnp.sqrt(hidden)
    return {
        # router: nn.Linear(hidden, num_experts), weight ~ N(0, 0.02)
        "wr": 0.02 * jax.random.normal(ks[0], (num_experts, hidden), jnp.float32),
        "br": jax.random.uniform(ks[1], (1, num_experts), jnp.float32, -bound, bound),
        # per-expert FFN: Linear(H, I) -> GELU(tanh) -> Linear(I, H), PyTorch layout
        "w1": 0.02 * jax.random.normal(ks[2], (num_experts, inter, hidden), jnp.float32),
        "b1": 0.02 * jax.random.normal(ks[3], (num_experts, 1, inter), jnp.float32),
        "w2": 0.02 * jax.random.normal(ks[4], (num_experts, hidden, inter), jnp.float32),
        "b2": 0.02 * jax.random.normal(ks[5], (num_experts, 1, hidden), jnp.float32),
    }


def ref_forward(x, p):
    """Pure-JAX f32 reference mirroring the PyTorch forward."""
    hp = jax.lax.Precision.HIGHEST
    logits = jnp.einsum("bsh,eh->bse", x, p["wr"], precision=hp) + p["br"][0]
    probs = jax.nn.softmax(logits, axis=-1)
    idx = jnp.argmax(probs, axis=-1, keepdims=True)
    out = jnp.zeros_like(x)
    for i in range(p["wr"].shape[0]):
        h = jnp.einsum("bsh,ih->bsi", x, p["w1"][i], precision=hp) + p["b1"][i, 0]
        h = _gelu_tanh(h)
        y = jnp.einsum("bsi,hi->bsh", h, p["w2"][i], precision=hp) + p["b2"][i, 0]
        out = out + (idx == i).astype(jnp.float32) * y
    return out, probs, logits


if __name__ == "__main__":
    B, S, H, E, I = 2, 8, 32, 4, 64
    key = jax.random.PRNGKey(0)
    kx, kp = jax.random.split(key)

    x = jax.random.normal(kx, (B, S, H), jnp.float32)
    params = init_params(kp, E, H, I)

    fwd = jax.jit(partial(expert_ffn_forward, tile_m=256))
    out, probs, logits = fwd(x, params)
    jax.block_until_ready((out, probs, logits))

    r_out, r_probs, r_logits = ref_forward(x, params)
    assert jnp.allclose(logits, r_logits, atol=1e-4, rtol=1e-4)
    assert jnp.allclose(probs, r_probs, atol=1e-4, rtol=1e-4)
    # expert matmuls run in bf16 (f32 accumulation) -> slightly looser tolerance
    assert jnp.allclose(out, r_out, atol=2e-2, rtol=2e-2), \
        float(jnp.max(jnp.abs(out - r_out)))

    print("KERNEL_OK")
</pallas_src>

<mosaic_0001>
module attributes {stable_mosaic.version = 11 : i64} {
  func.func @_grouped_ffn_kernel(%arg0: i32, %arg1: memref<5xi32, #tpu.memory_space<smem>>, %arg2: memref<256x32xbf16, #tpu.memory_space<vmem>>, %arg3: memref<1x32x64xbf16, #tpu.memory_space<vmem>>, %arg4: memref<1x1x64xf32, #tpu.memory_space<vmem>>, %arg5: memref<1x64x32xbf16, #tpu.memory_space<vmem>>, %arg6: memref<1x1x32xf32, #tpu.memory_space<vmem>>, %arg7: memref<256x32xf32, #tpu.memory_space<vmem>>) attributes {dimension_semantics = [#tpu.dimension_semantics<arbitrary>], iteration_bounds = array<i64: 5>, scalar_prefetch = 1 : i64, scratch_operands = 0 : i64, tpu.core_type = #tpu.core_type<tc>, window_params = [{transform_indices = @transform_0, window_bounds = array<i64: 256, 32>}, {transform_indices = @transform_1, window_bounds = array<i64: 1, 32, 64>}, {transform_indices = @transform_2, window_bounds = array<i64: 1, 1, 64>}, {transform_indices = @transform_3, window_bounds = array<i64: 1, 64, 32>}, {transform_indices = @transform_4, window_bounds = array<i64: 1, 1, 32>}, {transform_indices = @transform_5, window_bounds = array<i64: 256, 32>}]} {
    %c0 = arith.constant 0 : index
    %c0_0 = arith.constant 0 : index
    %0 = vector.load %arg2[%c0, %c0_0] : memref<256x32xbf16, #tpu.memory_space<vmem>>, vector<256x32xbf16>
    %c0_1 = arith.constant 0 : index
    %c0_2 = arith.constant 0 : index
    %c0_3 = arith.constant 0 : index
    %1 = vector.load %arg3[%c0_1, %c0_2, %c0_3] : memref<1x32x64xbf16, #tpu.memory_space<vmem>>, vector<1x32x64xbf16>
    %2 = vector.shape_cast %1 : vector<1x32x64xbf16> to vector<32x64xbf16>
    %cst = arith.constant dense<0.000000e+00> : vector<256x64xf32>
    %3 = tpu.matmul %0, %2, %cst {dimension_numbers = #tpu.dot_dimension_numbers<[1], [0], [0], [1], [0, 0, 1, 1], [], []>} : vector<256x32xbf16>, vector<32x64xbf16>, vector<256x64xf32> -> vector<256x64xf32>
    %c0_4 = arith.constant 0 : index
    %c0_5 = arith.constant 0 : index
    %c0_6 = arith.constant 0 : index
    %4 = vector.load %arg4[%c0_4, %c0_5, %c0_6] : memref<1x1x64xf32, #tpu.memory_space<vmem>>, vector<1x1x64xf32>
    %5 = vector.shape_cast %4 : vector<1x1x64xf32> to vector<1x64xf32>
    %6 = vector.broadcast %5 : vector<1x64xf32> to vector<256x64xf32>
    %7 = arith.addf %3, %6 : vector<256x64xf32>
    %cst_7 = arith.constant 5.000000e-01 : f32
    %8 = vector.broadcast %cst_7 : f32 to vector<256x64xf32>
    %9 = arith.mulf %8, %7 : vector<256x64xf32>
    %cst_8 = arith.constant 4.471500e-02 : f32
    %10 = vector.broadcast %cst_8 : f32 to vector<256x64xf32>
    %11 = arith.mulf %10, %7 : vector<256x64xf32>
    %12 = arith.mulf %11, %7 : vector<256x64xf32>
    %13 = arith.mulf %12, %7 : vector<256x64xf32>
    %14 = arith.addf %7, %13 : vector<256x64xf32>
    %cst_9 = arith.constant 0.797884583 : f32
    %15 = vector.broadcast %cst_9 : f32 to vector<256x64xf32>
    %16 = arith.mulf %15, %14 : vector<256x64xf32>
    %17 = math.tanh %16 : vector<256x64xf32>
    %cst_10 = arith.constant 1.000000e+00 : f32
    %18 = vector.broadcast %cst_10 : f32 to vector<256x64xf32>
    %19 = arith.addf %18, %17 : vector<256x64xf32>
    %20 = arith.mulf %9, %19 : vector<256x64xf32>
    %21 = arith.truncf %20 : vector<256x64xf32> to vector<256x64xbf16>
    %c0_11 = arith.constant 0 : index
    %c0_12 = arith.constant 0 : index
    %c0_13 = arith.constant 0 : index
    %22 = vector.load %arg5[%c0_11, %c0_12, %c0_13] : memref<1x64x32xbf16, #tpu.memory_space<vmem>>, vector<1x64x32xbf16>
    %23 = vector.shape_cast %22 : vector<1x64x32xbf16> to vector<64x32xbf16>
    %cst_14 = arith.constant dense<0.000000e+00> : vector<256x32xf32>
    %24 = tpu.matmul %21, %23, %cst_14 {dimension_numbers = #tpu.dot_dimension_numbers<[1], [0], [0], [1], [0, 0, 1, 1], [], []>} : vector<256x64xbf16>, vector<64x32xbf16>, vector<256x32xf32> -> vector<256x32xf32>
    %c0_15 = arith.constant 0 : index
    %c0_16 = arith.constant 0 : index
    %c0_17 = arith.constant 0 : index
    %25 = vector.load %arg6[%c0_15, %c0_16, %c0_17] : memref<1x1x32xf32, #tpu.memory_space<vmem>>, vector<1x1x32xf32>
    %26 = vector.shape_cast %25 : vector<1x1x32xf32> to vector<1x32xf32>
    %27 = vector.broadcast %26 : vector<1x32xf32> to vector<256x32xf32>
    %28 = arith.addf %24, %27 : vector<256x32xf32>
    %c0_18 = arith.constant 0 : index
    %c0_19 = arith.constant 0 : index
    %29 = vector.load %arg7[%c0_18, %c0_19] : memref<256x32xf32, #tpu.memory_space<vmem>>, vector<256x32xf32>
    tpu.vector_store %arg7[%c0_18, %c0_19], %28 {strides = array<i32>} : memref<256x32xf32, #tpu.memory_space<vmem>>, vector<256x32xf32>,
    return
  }
  func.func @transform_0(%arg0: i32, %arg1: memref<5xi32, #tpu.memory_space<smem>>) -> (i32, i32) {
    %c0_i32 = arith.constant 0 : i32
    %c0_i32_0 = arith.constant 0 : i32
    return %arg0, %c0_i32 : i32, i32
  }
  func.func @transform_1(%arg0: i32, %arg1: memref<5xi32, #tpu.memory_space<smem>>) -> (i32, i32, i32) {
    %0 = arith.index_cast %arg0 : i32 to index
    %1 = memref.load %arg1[%0] : memref<5xi32, #tpu.memory_space<smem>>
    %c0_i32 = arith.constant 0 : i32
    %c0_i32_0 = arith.constant 0 : i32
    %c0_i32_1 = arith.constant 0 : i32
    return %1, %c0_i32, %c0_i32_0 : i32, i32, i32
  }
  func.func @transform_2(%arg0: i32, %arg1: memref<5xi32, #tpu.memory_space<smem>>) -> (i32, i32, i32) {
    %0 = arith.index_cast %arg0 : i32 to index
    %1 = memref.load %arg1[%0] : memref<5xi32, #tpu.memory_space<smem>>
    %c0_i32 = arith.constant 0 : i32
    %c0_i32_0 = arith.constant 0 : i32
    %c0_i32_1 = arith.constant 0 : i32
    return %1, %c0_i32, %c0_i32_0 : i32, i32, i32
  }
  func.func @transform_3(%arg0: i32, %arg1: memref<5xi32, #tpu.memory_space<smem>>) -> (i32, i32, i32) {
    %0 = arith.index_cast %arg0 : i32 to index
    %1 = memref.load %arg1[%0] : memref<5xi32, #tpu.memory_space<smem>>
    %c0_i32 = arith.constant 0 : i32
    %c0_i32_0 = arith.constant 0 : i32
    %c0_i32_1 = arith.constant 0 : i32
    return %1, %c0_i32, %c0_i32_0 : i32, i32, i32
  }
  func.func @transform_4(%arg0: i32, %arg1: memref<5xi32, #tpu.memory_space<smem>>) -> (i32, i32, i32) {
    %0 = arith.index_cast %arg0 : i32 to index
    %1 = memref.load %arg1[%0] : memref<5xi32, #tpu.memory_space<smem>>
    %c0_i32 = arith.constant 0 : i32
    %c0_i32_0 = arith.constant 0 : i32
    %c0_i32_1 = arith.constant 0 : i32
    return %1, %c0_i32, %c0_i32_0 : i32, i32, i32
  }
  func.func @transform_5(%arg0: i32, %arg1: memref<5xi32, #tpu.memory_space<smem>>) -> (i32, i32) {
    %c0_i32 = arith.constant 0 : i32
    %c0_i32_0 = arith.constant 0 : i32
    return %arg0, %c0_i32 : i32, i32
  }
}

</mosaic_0001>

<bundles_post_ra>
// kernel: expert_ffn_forward.1
= control target key start
LH: loop header
LB: loop body
LE: loop exit
PB: predicated region body
PF: predicated region fallthrough
CT: control target
= control target key end

     0   :  { %s2157_s0 = inlined_call_operand.vmem [shape: s32[5], index: 0, kind: input, shape index: {}]   ;;  %s2158_s1 = inlined_call_operand.vmem [shape: bf16[1280,32], index: 1, kind: input, shape index: {}]   ;;  %s2159_s2 = inlined_call_operand.vmem [shape: bf16[4,32,64], index: 2, kind: input, shape index: {}]   ;;  %s2160_s3 = inlined_call_operand.vmem [shape: f32[4,1,64], index: 3, kind: input, shape index: {}]   ;;  %s2161_s4 = inlined_call_operand.vmem [shape: bf16[4,64,32], index: 4, kind: input, shape index: {}]   ;;  %s2162_s5 = inlined_call_operand.vmem [shape: f32[4,1,32], index: 5, kind: input, shape index: {}]   ;;  %s2163_s6 = inlined_call_operand.vmem [shape: f32[1280,32], index: 6, kind: output, shape index: {}]  }
   0x1   :  { %s11_s23 = sshll.u32 %s2157_s0, 4  ;;  %s12_s23 = int_to_ptr.vmem [resolvable:$true] %s11_s23 }
   0x2   :  { %s1642_s24 = scalar_lea.vmem %s12_s23, 16  ;;  %p1647_p1 = scmp.lt.s32.totalorder %s12_s23, %s12_s23 }
   0x3   :  { %p1643_p0 = scmp.ne.s32.totalorder %s12_s23, %s1642_s24  ;;  %p1648_p2 = scmp.lt.s32.totalorder %s1642_s24, %s1642_s24 }
   0x5   :  { %p1649_p3 = por %p1648_p2, %p1647_p1 }
   0x7   :  { %p1650_p4 = pnand %p1649_p3, %p1643_p0 }
   0x9   :  { %1653 = shalt.err (!%p1650_p4)  }
   0xa   :  { %s1664_s25 = smov [#allocation3]  }
   0xb   :  { %14 = dma.vmem_to_smem %s12_s23, 16, %s1664_s25, [#allocation2] }
   0xc   :  { %1658 = dma.done.wait [#allocation2], 16 }
   0xd   :  { %1659 = vsyncadd [#allocation2], 4294967280 }
   0xe   :  { %16 = sfence }
   0xf   :  { %s1703_s26 = smov 0  }
  0x10 LB: > { %s1709_s0 = sadd.s32 4294967295, %s1662_s26   ;;  %p1364_p5 = scmp.ge.s32.totalorder %s1662_s26, 1  ;;  %s1662_s26 = sphi %s1703_s26, %s22_s26  }
  0x11   : > { %p247_p6 = scmp.lt.s32.totalorder %s1662_s26, 6 }
  0x13   : > { %p248_p7 = pnand %p1364_p5, %p247_p6 }
  0x14   : > { %s301_s27 = sld [smem:[#allocation3 + %s1709_s0]] (!%p248_p7)  ;;  %s1365_s28 = sshll.u32 (!%p248_p7), %s1709_s0, 5  ;;  %vm467_vm0 = vcmask (!%p248_p7), 261120   ;;  %vm1020_vm1 = vcmask (!%p248_p7), 523264  }
  0x15   : > { %251 = sbr.rel (%p248_p7) target bundleno = 577 (0x241), region = 40  ;;  %p296_p8 = scmp.lt.s32.totalorder (!%p248_p7), %s1365_s28, 159 }
  0x16   : > { %s313_s13 = sld [smem:[#allocation3 + %s1709_s0]] (!%p248_p7) }
  0x17   : > { %s308_s18 = sld [smem:[#allocation3 + %s1709_s0]] (!%p248_p7) }
  0x18   : > { %s320_s22 = sld [smem:[#allocation3 + %s1709_s0]] (!%p248_p7) }
  0x1a   : > { %p302_p9 = scmp.lt.s32.totalorder (!%p248_p7), %s301_s27, 3 }
  0x1c   : > { %s2165_s28 = smov (!%p296_p8, %s1365_s28), 159  ;;  %s2167_s27 = smov (!%p302_p9, %s301_s27), 3 }
  0x1d   : > { %s1366_s29 = sshll.u32 %s2165_s28, 2  ;;  %s1431_s9 = sshll.u32 %s2167_s27, 4 }
  0x1e   : > { %s1721_s8 = scalar_lea.vmem %s2158_s1, %s1366_s29  ;;  %s306_s12 = scalar_lea.vmem %s2159_s2, %s1431_s9 }
  0x1f   : > { %v1558_v0 = vld [vmem:[%s1721_s8] sm:$0xff]   ;;  %v1557_v2 = vld [vmem:[%s306_s12 + $0x8] sm:$0xff]   ;;  %v1560_v4 = vld [vmem:[%s1721_s8 + $0x10] sm:$0xff]   ;;  %p314_p10 = scmp.lt.s32.totalorder %s313_s13, 3  ;;  %p309_p11 = scmp.lt.s32.totalorder %s308_s18, 3 }
  0x20   : > { %1475 = vmatprep.mubr.msk.bf16.mxu0 %vm467_vm0, %v1558_v0  ;;  %v1556_v1 = vld [vmem:[%s306_s12] sm:$0xff]   ;;  %v1559_v3 = vld [vmem:[%s1721_s8 + $0x8] sm:$0xff]   ;;  %v1561_v5 = vld [vmem:[%s1721_s8 + $0x18] sm:$0xff]   ;;  %p321_p12 = scmp.lt.s32.totalorder %s320_s22, 3  ;;  %s1372_s27 = sshll.u32 %s2165_s28, 3 }
  0x21   : > { %1471 = vmatprep.subr.bf16.mxu0 %v1556_v1  ;;  %v1562_v6 = vld [vmem:[%s1721_s8 + $0x20] sm:$0xff]   ;;  %v1563_v7 = vld [vmem:[%s1721_s8 + $0x28] sm:$0xff]   ;;  %v1564_v8 = vld [vmem:[%s1721_s8 + $0x30] sm:$0xff]   ;;  %s2169_s13 = smov (!%p314_p10, %s313_s13), 3  ;;  %s2171_s18 = smov (!%p309_p11, %s308_s18), 3 }
  0x22   : > { %1472 = vmatpush3.bf16.msra.mxu0 %v1556_v1  ;;  %v1565_v9 = vld [vmem:[%s1721_s8 + $0x38] sm:$0xff]   ;;  %v1566_v10 = vld [vmem:[%s1721_s8 + $0x40] sm:$0xff]   ;;  %v1567_v11 = vld [vmem:[%s1721_s8 + $0x48] sm:$0xff]   ;;  %s1432_s14 = sshll.u32 %s2169_s13, 5  ;;  %s311_s21 = scalar_lea.vmem %s2160_s3, %s2171_s18 }
  0x23   : > { %1473 = vmatprep.subr.bf16.mxu0 %v1557_v2  ;;  %v1568_v12 = vld [vmem:[%s1721_s8 + $0x50] sm:$0xff]   ;;  %v1569_v13 = vld [vmem:[%s1721_s8 + $0x58] sm:$0xff]   ;;  %v1570_v14 = vld [vmem:[%s1721_s8 + $0x60] sm:$0xff]   ;;  %s318_s17 = scalar_lea.vmem %s2161_s4, %s1432_s14  ;;  %s2173_s22 = smov (!%p321_p12, %s320_s22), 3 }
  0x24   : > { %v1571_v15 = vld [vmem:[%s1721_s8 + $0x68] sm:$0xff]   ;;  %v1572_v16 = vld [vmem:[%s1721_s8 + $0x70] sm:$0xff]   ;;  %v1573_v17 = vld [vmem:[%s1721_s8 + $0x78] sm:$0xff]   ;;  %s323_s25 = scalar_lea.vmem %s2162_s5, %s2173_s22  ;;  %s2056_s7 = scalar_lea.vmem %s2163_s6, %s1372_s27 }
  0x25   : > { %v1574_v18 = vld [vmem:[%s318_s17] sm:$0xff]   ;;  %v1575_v19 = vld [vmem:[%s318_s17 + $0x8] sm:$0xff]   ;;  %v1576_v20 = vld [vmem:[%s318_s17 + $0x10] sm:$0xff]  }
  0x26   : > { %1474 = vmatpush3.bf16.msra.mxu0 %v1557_v2  ;;  %1507 = vmatprep.subr.bf16.mxu1 %v1574_v18  ;;  %v1577_v21 = vld [vmem:[%s318_s17 + $0x18] sm:$0xff]   ;;  %v1766_v22 = vld [vmem:[%s311_s21] ss:$0 sm:$0xff] }
  0x27   : > { %1508 = vmatpush3.bf16.msra.mxu1 %v1574_v18 }
  0x28   : > { %1509 = vmatprep.subr.bf16.mxu1 %v1575_v19 }
  0x29   : > { %1476 = vmatmul.mubr.msk.bf16.vlgmr.msra.gmra.mrb[0].mxu0 %vm467_vm0, %v1559_v3 }
  0x2a   : > { %1479 = vmatprep.mubr.msk.bf16.mxu0 %vm467_vm0, %v1560_v4 }
  0x2b   : > { %1510 = vmatpush3.bf16.msra.mxu1 %v1575_v19 }
  0x2c   : > { %1511 = vmatprep.subr.bf16.mxu1 %v1576_v20 }
  0x2f   : > { %1512 = vmatpush3.bf16.msra.mxu1 %v1576_v20 }
  0x30   : > { %1513 = vmatprep.subr.bf16.mxu1 %v1577_v21 }
  0x31   : > { %1480 = vmatmul.mubr.msk.bf16.gmra.mrb[4].mxu0 %vm467_vm0, %v1561_v5 }
  0x32   : > { %1483 = vmatprep.mubr.msk.bf16.mxu0 %vm467_vm0, %v1562_v6 }
  0x33   : > { %1514 = vmatpush3.bf16.msra.mxu1 %v1577_v21 }
  0x39   : > { %1484 = vmatmul.mubr.msk.bf16.gmra.mrb[8].mxu0 %vm467_vm0, %v1563_v7 }
  0x3a   : > { %1487 = vmatprep.mubr.msk.bf16.mxu0 %vm467_vm0, %v1564_v8 }
  0x41   : > { %1488 = vmatmul.mubr.msk.bf16.gmra.mrb[12].mxu0 %vm467_vm0, %v1565_v9 }
  0x42   : > { %1491 = vmatprep.mubr.msk.bf16.mxu0 %vm467_vm0, %v1566_v10 }
  0x49   : > { %1492 = vmatmul.mubr.msk.bf16.gmra.mrb[16].mxu0 %vm467_vm0, %v1567_v11 }
  0x4a   : > { %1495 = vmatprep.mubr.msk.bf16.mxu0 %vm467_vm0, %v1568_v12 }
  0x51   : > { %1496 = vmatmul.mubr.msk.bf16.gmra.mrb[20].mxu0 %vm467_vm0, %v1569_v13 }
  0x52   : > { %1499 = vmatprep.mubr.msk.bf16.mxu0 %vm467_vm0, %v1570_v14 }
  0x59   : > { %1500 = vmatmul.mubr.msk.bf16.gmra.mrb[24].mxu0 %vm467_vm0, %v1571_v15 }
  0x5a   : > { %1503 = vmatprep.mubr.msk.bf16.mxu0 %vm467_vm0, %v1572_v16 }
  0x61   : > { %1504 = vmatmul.mubr.msk.bf16.gmra.mrb[28].mxu0 %vm467_vm0, %v1573_v17 }
  0xfc   : > { %v1477_v23 = vpop.f32.mrb[0].mxu0 }
  0xfd   : > { %v559_v24 = vadd.f32 %v1477_v23, %v1766_v22  ;;  %v550_v25 = vpop.f32.mrb[1].mxu0 }
  0xfe   : > { %v551_v26 = vadd.f32 %v1766_v22, %v550_v25  ;;  %v1478_v27 = vpop.f32.mrb[2].mxu0 }
  0xff   : > { %v711_v28 = vmul.f32 0.044715, %v559_v24  ;;  %v562_v29 = vadd.f32 %v1478_v27, %v1766_v22  ;;  %v553_v30 = vpop.f32.mrb[3].mxu0  ;;  %v1774_v43 = vmul.f32 0.5, %v559_v24 }
 0x100   : > { %v709_v31 = vmul.f32 0.044715, %v551_v26  ;;  %v554_v32 = vadd.f32 %v1766_v22, %v553_v30  ;;  %v1772_v41 = vmul.f32 0.5, %v551_v26 }
 0x101   : > { %v743_v33 = vmul.f32 %v711_v28, %v559_v24  ;;  %v712_v34 = vmul.f32 0.044715, %v562_v29  ;;  %v1777_v48 = vmul.f32 0.5, %v562_v29 }
 0x102   : > { %v741_v35 = vmul.f32 %v709_v31, %v551_v26  ;;  %v710_v36 = vmul.f32 0.044715, %v554_v32  ;;  %v1780_v51 = vmul.f32 0.5, %v554_v32 }
 0x103   : > { %v775_v37 = vmul.f32 %v743_v33, %v559_v24  ;;  %v744_v38 = vmul.f32 %v712_v34, %v562_v29 }
 0x104   : > { %v742_v39 = vmul.f32 %v710_v36, %v554_v32  ;;  %v1481_v40 = vpop.f32.mrb[4].mxu0  ;;  %v773_v42 = vmul.f32 %v741_v35, %v551_v26 }
 0x105   : > { %v807_v44 = vadd.f32 %v775_v37, %v559_v24  ;;  %v776_v45 = vmul.f32 %v744_v38, %v562_v29  ;;  %v575_v46 = vadd.f32 %v1481_v40, %v1766_v22  ;;  %v566_v47 = vpop.f32.mrb[5].mxu0 }
 0x106   : > { %v567_v49 = vadd.f32 %v1766_v22, %v566_v47  ;;  %v1482_v50 = vpop.f32.mrb[6].mxu0  ;;  %v774_v52 = vmul.f32 %v742_v39, %v554_v32  ;;  %v805_v53 = vadd.f32 %v773_v42, %v551_v26 }
 0x107   : > { %v839_v54 = vmul.f32 0.7978846, %v807_v44  ;;  %v808_v55 = vadd.f32 %v776_v45, %v562_v29  ;;  %v715_v56 = vmul.f32 0.044715, %v575_v46  ;;  %v578_v57 = vadd.f32 %v1482_v50, %v1766_v22  ;;  %v569_v58 = vpop.f32.mrb[7].mxu0 }
 0x108   : > { %v713_v59 = vmul.f32 0.044715, %v567_v49  ;;  %v570_v60 = vadd.f32 %v1766_v22, %v569_v58  ;;  %v806_v61 = vadd.f32 %v774_v52, %v554_v32  ;;  %v837_v62 = vmul.f32 0.7978846, %v805_v53 }
 0x109   : > { %1578 = vtanh.f32 %v839_v54  ;;  %v840_v63 = vmul.f32 0.7978846, %v808_v55  ;;  %v747_v0 = vmul.f32 %v715_v56, %v575_v46  ;;  %v716_v1 = vmul.f32 0.044715, %v578_v57 }
 0x10a   : > { %v745_v2 = vmul.f32 %v713_v59, %v567_v49  ;;  %v714_v3 = vmul.f32 0.044715, %v570_v60  ;;  %v838_v4 = vmul.f32 0.7978846, %v806_v61  ;;  %1580 = vtanh.f32 %v837_v62 }
 0x10b   : > { %1582 = vtanh.f32 %v840_v63  ;;  %v779_v5 = vmul.f32 %v747_v0, %v575_v46  ;;  %v748_v6 = vmul.f32 %v716_v1, %v578_v57  ;;  %v1784_v7 = vmul.f32 0.5, %v567_v49 }
 0x10c   : > { %v777_v8 = vmul.f32 %v745_v2, %v567_v49  ;;  %v746_v9 = vmul.f32 %v714_v3, %v570_v60  ;;  %v1485_v10 = vpop.f32.mrb[8].mxu0  ;;  %1584 = vtanh.f32 %v838_v4  ;;  %v1786_v11 = vmul.f32 0.5, %v570_v60 }
 0x10d   : > { %v811_v12 = vadd.f32 %v779_v5, %v575_v46  ;;  %v780_v13 = vmul.f32 %v748_v6, %v578_v57  ;;  %v1789_v14 = vadd.f32 %v1485_v10, %v1766_v22  ;;  %v582_v15 = vpop.f32.mrb[9].mxu0  ;;  %v1791_v16 = vmul.f32 0.5, %v575_v46 }
 0x10e   : > { %v809_v17 = vadd.f32 %v777_v8, %v567_v49  ;;  %v778_v18 = vmul.f32 %v746_v9, %v570_v60  ;;  %v583_v19 = vadd.f32 %v1766_v22, %v582_v15  ;;  %v1486_v20 = vpop.f32.mrb[10].mxu0  ;;  %v1794_v21 = vmul.f32 0.5, %v578_v57 }
 0x10f   : > { %v843_v23 = vmul.f32 0.7978846, %v811_v12  ;;  %v812_v24 = vadd.f32 %v780_v13, %v578_v57  ;;  %v719_v25 = vmul.f32 0.044715, %v1789_v14  ;;  %v1798_v26 = vadd.f32 %v1486_v20, %v1766_v22  ;;  %v585_v27 = vpop.f32.mrb[11].mxu0 }
 0x110   : > { %v841_v28 = vmul.f32 0.7978846, %v809_v17  ;;  %v810_v29 = vadd.f32 %v778_v18, %v570_v60  ;;  %v717_v30 = vmul.f32 0.044715, %v583_v19  ;;  %v1801_v31 = vadd.f32 %v1766_v22, %v585_v27 }
 0x111   : > { %1586 = vtanh.f32 %v843_v23  ;;  %v844_v32 = vmul.f32 0.7978846, %v812_v24  ;;  %v751_v33 = vmul.f32 %v719_v25, %v1789_v14  ;;  %v720_v34 = vmul.f32 0.044715, %v1798_v26 }
 0x112   : > { %1588 = vtanh.f32 %v841_v28  ;;  %v842_v35 = vmul.f32 0.7978846, %v810_v29  ;;  %v749_v36 = vmul.f32 %v717_v30, %v583_v19  ;;  %v718_v37 = vmul.f32 0.044715, %v1801_v31 }
 0x113   : > { %v1579_v38 = vpop.eup %1578  ;;  %1590 = vtanh.f32 %v844_v32  ;;  %v783_v39 = vmul.f32 %v751_v33, %v1789_v14  ;;  %v752_v40 = vmul.f32 %v720_v34, %v1798_v26  ;;  %v1808_v42 = vmul.f32 0.5, %v583_v19 }
 0x114   : > { %v1581_v44 = vpop.eup %1580  ;;  %1592 = vtanh.f32 %v842_v35  ;;  %v781_v45 = vmul.f32 %v749_v36, %v583_v19  ;;  %v750_v46 = vmul.f32 %v718_v37, %v1801_v31  ;;  %v1489_v47 = vpop.f32.mrb[12].mxu0  ;;  %v903_v49 = vadd.f32 1.0, %v1579_v38 }
 0x115   : > { %v1583_v50 = vpop.eup %1582  ;;  %v815_v52 = vadd.f32 %v783_v39, %v1789_v14  ;;  %v784_v53 = vmul.f32 %v752_v40, %v1798_v26  ;;  %v1814_v54 = vadd.f32 %v1489_v47, %v1766_v22  ;;  %v598_v55 = vpop.f32.mrb[13].mxu0  ;;  %v901_v56 = vadd.f32 1.0, %v1581_v44 }
 0x116   : > { %v1585_v57 = vpop.eup %1584  ;;  %v813_v58 = vadd.f32 %v781_v45, %v583_v19  ;;  %v782_v59 = vmul.f32 %v750_v46, %v1801_v31  ;;  %v1818_v60 = vadd.f32 %v1766_v22, %v598_v55  ;;  %v1490_v61 = vpop.f32.mrb[14].mxu0  ;;  %v904_v62 = vadd.f32 1.0, %v1583_v50 }
 0x117   : > { %v847_v63 = vmul.f32 0.7978846, %v815_v52  ;;  %v816_v0 = vadd.f32 %v784_v53, %v1798_v26  ;;  %v723_v1 = vmul.f32 0.044715, %v1814_v54  ;;  %v1823_v2 = vadd.f32 %v1490_v61, %v1766_v22  ;;  %v601_v3 = vpop.f32.mrb[15].mxu0 }
 0x118   : > { %v845_v4 = vmul.f32 0.7978846, %v813_v58  ;;  %v814_v5 = vadd.f32 %v782_v59, %v1801_v31  ;;  %v721_v6 = vmul.f32 0.044715, %v1818_v60  ;;  %v1828_v8 = vadd.f32 %v1766_v22, %v601_v3 }
 0x119   : > { %1594 = vtanh.f32 %v847_v63  ;;  %v848_v9 = vmul.f32 0.7978846, %v816_v0  ;;  %v755_v10 = vmul.f32 %v723_v1, %v1814_v54  ;;  %v724_v12 = vmul.f32 0.044715, %v1823_v2 }
 0x11a   : > { %1596 = vtanh.f32 %v845_v4  ;;  %v846_v13 = vmul.f32 0.7978846, %v814_v5  ;;  %v753_v15 = vmul.f32 %v721_v6, %v1818_v60  ;;  %v722_v17 = vmul.f32 0.044715, %v1828_v8 }
 0x11b   : > { %v1834_v18 = vpop.eup %1586  ;;  %1598 = vtanh.f32 %v848_v9  ;;  %v787_v19 = vmul.f32 %v755_v10, %v1814_v54  ;;  %v756_v20 = vmul.f32 %v724_v12, %v1823_v2  ;;  %v902_v23 = vadd.f32 1.0, %v1585_v57 }
 0x11c   : > { %v1589_v24 = vpop.eup %1588  ;;  %1600 = vtanh.f32 %v846_v13  ;;  %v785_v25 = vmul.f32 %v753_v15, %v1818_v60  ;;  %v754_v27 = vmul.f32 %v722_v17, %v1828_v8  ;;  %v1493_v28 = vpop.f32.mrb[16].mxu0  ;;  %v933_v29 = vmul.f32 %v901_v56, %v1772_v41 }
 0x11d   : > { %v1841_v30 = vpop.eup %1590  ;;  %v819_v32 = vadd.f32 %v787_v19, %v1814_v54  ;;  %v788_v33 = vmul.f32 %v756_v20, %v1823_v2  ;;  %v1846_v34 = vadd.f32 %v1493_v28, %v1766_v22  ;;  %v614_v35 = vpop.f32.mrb[17].mxu0  ;;  %v934_v36 = vmul.f32 %v902_v23, %v1780_v51 }
 0x11e   : > { %v1593_v37 = vpop.eup %1592  ;;  %v817_v38 = vadd.f32 %v785_v25, %v1818_v60  ;;  %v786_v39 = vmul.f32 %v754_v27, %v1828_v8  ;;  %v1852_v40 = vadd.f32 %v1766_v22, %v614_v35  ;;  %v1494_v41 = vpop.f32.mrb[18].mxu0  ;;  %v935_v44 = vmul.f32 %v903_v49, %v1774_v43 }
 0x11f   : > { %v851_v45 = vmul.f32 0.7978846, %v819_v32  ;;  %v820_v46 = vadd.f32 %v788_v33, %v1823_v2  ;;  %v727_v47 = vmul.f32 0.044715, %v1846_v34  ;;  %v965_v50 = vpack.c.bf16 %v934_v36, %v933_v29  ;;  %v617_v52 = vpop.f32.mrb[19].mxu0 }
 0x120   : > { %v849_v53 = vmul.f32 0.7978846, %v817_v38  ;;  %v818_v51 = vadd.f32 %v786_v39, %v1828_v8  ;;  %v725_v55 = vmul.f32 0.044715, %v1852_v40  ;;  %v1860_v56 = vadd.f32 %v1494_v41, %v1766_v22 }
 0x121   : > { %1602 = vtanh.f32 %v851_v45  ;;  %v852_v57 = vmul.f32 0.7978846, %v820_v46  ;;  %v759_v58 = vmul.f32 %v727_v47, %v1846_v34  ;;  %1515 = vmatprep.mubr.msk.bf16.mxu1 %vm1020_vm1, %v965_v50  ;;  %v936_v43 = vmul.f32 %v904_v62, %v1777_v48 }
 0x122   : > { %1604 = vtanh.f32 %v849_v53  ;;  %v850_v49 = vmul.f32 0.7978846, %v818_v51  ;;  %v757_v59 = vmul.f32 %v725_v55, %v1852_v40  ;;  %v728_v61 = vmul.f32 0.044715, %v1860_v56 }
 0x123   : > { %v1867_v63 = vpop.eup %1594  ;;  %1606 = vtanh.f32 %v852_v57  ;;  %v791_v0 = vmul.f32 %v759_v58, %v1846_v34  ;;  %v966_v1 = vpack.c.bf16 %v936_v43, %v935_v44  ;;  %v1871_v3 = vadd.f32 %v1766_v22, %v617_v52 }
 0x124   : > { %v1873_v4 = vpop.eup %1596  ;;  %1608 = vtanh.f32 %v850_v49  ;;  %v789_v48 = vmul.f32 %v757_v59, %v1852_v40  ;;  %v760_v62 = vmul.f32 %v728_v61, %v1860_v56  ;;  %v1497_v5 = vpop.f32.mrb[20].mxu0  ;;  %v905_v6 = vadd.f32 1.0, %v1589_v24 }
 0x125   : > { %v1877_v9 = vpop.eup %1598  ;;  %v823_v10 = vadd.f32 %v791_v0, %v1846_v34  ;;  %1516 = vmatmul.mubr.msk.bf16.vlgmr.msra.gmra.mrb[0].mxu1 %vm1020_vm1, %v966_v1  ;;  %v726_v12 = vmul.f32 0.044715, %v1871_v3  ;;  %v1883_v13 = vadd.f32 %v1497_v5, %v1766_v22  ;;  %v630_v15 = vpop.f32.mrb[21].mxu0  ;;  %v906_v17 = vadd.f32 1.0, %v1593_v37 }
 0x126   : > { %v1885_v19 = vpop.eup %1600  ;;  %v821_v20 = vadd.f32 %v789_v48, %v1852_v40  ;;  %v792_v23 = vmul.f32 %v760_v62, %v1860_v56  ;;  %v1890_v24 = vadd.f32 %v1766_v22, %v630_v15  ;;  %v937_v25 = vmul.f32 %v905_v6, %v1784_v7  ;;  %v1498_v27 = vpop.f32.mrb[22].mxu0 }
 0x127   : > { %v855_v28 = vmul.f32 0.7978846, %v823_v10  ;;  %v758_v29 = vmul.f32 %v726_v12, %v1871_v3  ;;  %v731_v32 = vmul.f32 0.044715, %v1883_v13  ;;  %v938_v33 = vmul.f32 %v906_v17, %v1786_v11  ;;  %v633_v35 = vpop.f32.mrb[23].mxu0 }
 0x128   : > { %v853_v36 = vmul.f32 0.7978846, %v821_v20  ;;  %v824_v37 = vadd.f32 %v792_v23, %v1860_v56  ;;  %v729_v38 = vmul.f32 0.044715, %v1890_v24  ;;  %v1899_v39 = vadd.f32 %v1498_v27, %v1766_v22 }
 0x129   : > { %1610 = vtanh.f32 %v855_v28  ;;  %v790_v7 = vmul.f32 %v758_v29, %v1871_v3  ;;  %v763_v41 = vmul.f32 %v731_v32, %v1883_v13  ;;  %v967_v44 = vpack.c.bf16 %v938_v33, %v937_v25 }
 0x12a   : > { %1612 = vtanh.f32 %v853_v36  ;;  %v856_v45 = vmul.f32 0.7978846, %v824_v37  ;;  %v761_v46 = vmul.f32 %v729_v38, %v1890_v24  ;;  %v732_v11 = vmul.f32 0.044715, %v1899_v39 }
 0x12b   : > { %v1905_v47 = vpop.eup %1602  ;;  %v822_v50 = vadd.f32 %v790_v7, %v1871_v3  ;;  %v795_v52 = vmul.f32 %v763_v41, %v1883_v13  ;;  %1519 = vmatprep.mubr.msk.bf16.mxu1 %vm1020_vm1, %v967_v44  ;;  %v907_v53 = vadd.f32 1.0, %v1834_v18  ;;  %v908_v51 = vadd.f32 1.0, %v1841_v30 }
 0x12c   : > { %v1912_v55 = vpop.eup %1604  ;;  %1614 = vtanh.f32 %v856_v45  ;;  %v793_v57 = vmul.f32 %v761_v46, %v1890_v24  ;;  %v764_v58 = vmul.f32 %v732_v11, %v1899_v39  ;;  %v1917_v43 = vadd.f32 %v1766_v22, %v633_v35  ;;  %v1501_v49 = vpop.f32.mrb[24].mxu0 }
 0x12d   : > { %v1919_v59 = vpop.eup %1606  ;;  %v854_v61 = vmul.f32 0.7978846, %v822_v50  ;;  %v827_v0 = vadd.f32 %v795_v52, %v1883_v13  ;;  %v939_v18 = vmul.f32 %v907_v53, %v1791_v16  ;;  %v940_v30 = vmul.f32 %v908_v51, %v1794_v21  ;;  %v646_v1 = vpop.f32.mrb[25].mxu0 }
 0x12e   : > { %v1924_v48 = vpop.eup %1608  ;;  %v825_v62 = vadd.f32 %v793_v57, %v1890_v24  ;;  %v796_v5 = vmul.f32 %v764_v58, %v1899_v39  ;;  %v730_v6 = vmul.f32 0.044715, %v1917_v43  ;;  %v1930_v10 = vadd.f32 %v1501_v49, %v1766_v22  ;;  %v1502_v12 = vpop.f32.mrb[26].mxu0 }
 0x12f   : > { %1616 = vtanh.f32 %v854_v61  ;;  %v859_v15 = vmul.f32 0.7978846, %v827_v0  ;;  %v968_v17 = vpack.c.bf16 %v940_v30, %v939_v18  ;;  %v1933_v16 = vadd.f32 %v1766_v22, %v646_v1  ;;  %v649_v21 = vpop.f32.mrb[27].mxu0 }
 0x130   : > { %v857_v20 = vmul.f32 0.7978846, %v825_v62  ;;  %v828_v23 = vadd.f32 %v796_v5, %v1899_v39  ;;  %v762_v25 = vmul.f32 %v730_v6, %v1917_v43  ;;  %v735_v27 = vmul.f32 0.044715, %v1930_v10 }
 0x131   : > { %1618 = vtanh.f32 %v859_v15  ;;  %1520 = vmatmul.mubr.msk.bf16.gmra.mrb[4].mxu1 %vm1020_vm1, %v968_v17  ;;  %v733_v28 = vmul.f32 0.044715, %v1933_v16  ;;  %v686_v29 = vmul.f32 0.5, %v1801_v31  ;;  %v909_v32 = vadd.f32 1.0, %v1873_v4 }
 0x132   : > { %1620 = vtanh.f32 %v857_v20  ;;  %v860_v33 = vmul.f32 0.7978846, %v828_v23  ;;  %v794_v35 = vmul.f32 %v762_v25, %v1917_v43  ;;  %v767_v36 = vmul.f32 %v735_v27, %v1930_v10 }
 0x133   : > { %v1944_v37 = vpop.eup %1610  ;;  %v765_v38 = vmul.f32 %v733_v28, %v1933_v16  ;;  %v910_v7 = vadd.f32 1.0, %v1885_v19  ;;  %v941_v41 = vmul.f32 %v909_v32, %v1808_v42  ;;  %v1950_v44 = vadd.f32 %v1502_v12, %v1766_v22 }
 0x134   : > { %v1952_v31 = vpop.eup %1612  ;;  %1622 = vtanh.f32 %v860_v33  ;;  %v826_v4 = vadd.f32 %v794_v35, %v1917_v43  ;;  %v799_v45 = vmul.f32 %v767_v36, %v1930_v10  ;;  %v687_v46 = vmul.f32 0.5, %v1789_v14  ;;  %v1505_v11 = vpop.f32.mrb[28].mxu0 }
 0x135   : > { %v797_v50 = vmul.f32 %v765_v38, %v1933_v16  ;;  %v942_v52 = vmul.f32 %v910_v7, %v686_v29  ;;  %v736_v19 = vmul.f32 0.044715, %v1950_v44  ;;  %v688_v42 = vmul.f32 0.5, %v1798_v26  ;;  %v662_v53 = vpop.f32.mrb[29].mxu0 }
 0x136   : > { %v1960_v51 = vpop.eup %1614  ;;  %v858_v57 = vmul.f32 0.7978846, %v826_v4  ;;  %v831_v58 = vadd.f32 %v799_v45, %v1930_v10  ;;  %v911_v49 = vadd.f32 1.0, %v1867_v63  ;;  %v912_v61 = vadd.f32 1.0, %v1877_v9  ;;  %v1506_v0 = vpop.f32.mrb[30].mxu0 }
 0x137   : > { %v829_v14 = vadd.f32 %v797_v50, %v1933_v16  ;;  %v969_v18 = vpack.c.bf16 %v942_v52, %v941_v41  ;;  %v768_v30 = vmul.f32 %v736_v19, %v1950_v44  ;;  %v1968_v1 = vadd.f32 %v1766_v22, %v649_v21  ;;  %v665_v26 = vpop.f32.mrb[31].mxu0 }
 0x138   : > { %1624 = vtanh.f32 %v858_v57  ;;  %v863_v62 = vmul.f32 0.7978846, %v831_v58  ;;  %v943_v5 = vmul.f32 %v911_v49, %v687_v46  ;;  %v944_v6 = vmul.f32 %v912_v61, %v688_v42 }
 0x139   : > { %v1617_v12 = vpop.eup %1616  ;;  %v861_v15 = vmul.f32 0.7978846, %v829_v14  ;;  %1523 = vmatprep.mubr.msk.bf16.mxu1 %vm1020_vm1, %v969_v18  ;;  %v800_v63 = vmul.f32 %v768_v30, %v1950_v44  ;;  %v734_v9 = vmul.f32 0.044715, %v1968_v1  ;;  %v1974_v17 = vadd.f32 %v1505_v11, %v1766_v22 }
 0x13a   : > { %1626 = vtanh.f32 %v863_v62  ;;  %v970_v20 = vpack.c.bf16 %v944_v6, %v943_v5  ;;  %v1977_v21 = vadd.f32 %v1766_v22, %v662_v53  ;;  %v689_v23 = vmul.f32 0.5, %v1818_v60 }
 0x13b   : > { %v1980_v25 = vpop.eup %1618  ;;  %1628 = vtanh.f32 %v861_v15  ;;  %v832_v27 = vadd.f32 %v800_v63, %v1950_v44  ;;  %v766_v28 = vmul.f32 %v734_v9, %v1968_v1  ;;  %v739_v29 = vmul.f32 0.044715, %v1974_v17 }
 0x13c   : > { %v1621_v32 = vpop.eup %1620  ;;  %1524 = vmatmul.mubr.msk.bf16.gmra.mrb[8].mxu1 %vm1020_vm1, %v970_v20  ;;  %v737_v33 = vmul.f32 0.044715, %v1977_v21  ;;  %v690_v35 = vmul.f32 0.5, %v1828_v8  ;;  %v913_v36 = vadd.f32 1.0, %v1912_v55  ;;  %v914_v60 = vadd.f32 1.0, %v1924_v48 }
 0x13d   : > { %v864_v38 = vmul.f32 0.7978846, %v832_v27  ;;  %v798_v7 = vmul.f32 %v766_v28, %v1968_v1  ;;  %v771_v41 = vmul.f32 %v739_v29, %v1974_v17  ;;  %v1993_v4 = vadd.f32 %v1506_v0, %v1766_v22 }
 0x13e   : > { %v1623_v45 = vpop.eup %1622  ;;  %v769_v46 = vmul.f32 %v737_v33, %v1977_v21  ;;  %v945_v11 = vmul.f32 %v913_v36, %v689_v23  ;;  %v946_v50 = vmul.f32 %v914_v60, %v690_v35  ;;  %v691_v52 = vmul.f32 0.5, %v1814_v54 }
 0x13f   : > { %1630 = vtanh.f32 %v864_v38  ;;  %v830_v8 = vadd.f32 %v798_v7, %v1968_v1  ;;  %v803_v55 = vmul.f32 %v771_v41, %v1974_v17  ;;  %v740_v48 = vmul.f32 0.044715, %v1993_v4 }
 0x140   : > { %v801_v19 = vmul.f32 %v769_v46, %v1977_v21  ;;  %v971_v42 = vpack.c.bf16 %v946_v50, %v945_v11  ;;  %v692_v53 = vmul.f32 0.5, %v1823_v2  ;;  %v915_v57 = vadd.f32 1.0, %v1905_v47 }
 0x141   : > { %v862_v58 = vmul.f32 0.7978846, %v830_v8  ;;  %v835_v49 = vadd.f32 %v803_v55, %v1974_v17  ;;  %v772_v61 = vmul.f32 %v740_v48, %v1993_v4  ;;  %v916_v54 = vadd.f32 1.0, %v1919_v59 }
 0x142   : > { %v1625_v0 = vpop.eup %1624  ;;  %v833_v14 = vadd.f32 %v801_v19, %v1977_v21  ;;  %1527 = vmatprep.mubr.msk.bf16.mxu1 %vm1020_vm1, %v971_v42  ;;  %v947_v18 = vmul.f32 %v915_v57, %v691_v52  ;;  %v2009_v30 = vadd.f32 %v1766_v22, %v665_v26  ;;  %v693_v2 = vmul.f32 0.5, %v1852_v40 }
 0x143   : > { %1632 = vtanh.f32 %v862_v58  ;;  %v867_v47 = vmul.f32 0.7978846, %v835_v49  ;;  %v804_v62 = vmul.f32 %v772_v61, %v1993_v4  ;;  %v948_v5 = vmul.f32 %v916_v54, %v692_v53 }
 0x144   : > { %v1627_v6 = vpop.eup %1626  ;;  %v865_v15 = vmul.f32 0.7978846, %v833_v14  ;;  %v738_v59 = vmul.f32 0.044715, %v2009_v30  ;;  %v694_v63 = vmul.f32 0.5, %v1871_v3  ;;  %v917_v9 = vadd.f32 1.0, %v1952_v31 }
 0x145   : > { %v1629_v20 = vpop.eup %1628  ;;  %1634 = vtanh.f32 %v867_v47  ;;  %v836_v22 = vadd.f32 %v804_v62, %v1993_v4  ;;  %v972_v26 = vpack.c.bf16 %v948_v5, %v947_v18  ;;  %v918_v23 = vadd.f32 1.0, %v1617_v12 }
 0x146   : > { %1636 = vtanh.f32 %v865_v15  ;;  %v770_v40 = vmul.f32 %v738_v59, %v2009_v30  ;;  %v949_v27 = vmul.f32 %v917_v9, %v693_v2  ;;  %v695_v33 = vmul.f32 0.5, %v1846_v34 }
 0x147   : > { %v868_v28 = vmul.f32 0.7978846, %v836_v22  ;;  %1528 = vmatmul.mubr.msk.bf16.gmra.mrb[12].mxu1 %vm1020_vm1, %v972_v26  ;;  %v950_v29 = vmul.f32 %v918_v23, %v694_v63  ;;  %v919_v3 = vadd.f32 1.0, %v1944_v37  ;;  %v696_v35 = vmul.f32 0.5, %v1860_v56 }
 0x148   : > { %v802_v31 = vmul.f32 %v770_v40, %v2009_v30  ;;  %v920_v36 = vadd.f32 1.0, %v1960_v51  ;;  %v697_v12 = vmul.f32 0.5, %v1890_v24  ;;  %v698_v7 = vmul.f32 0.5, %v1917_v43 }
 0x149   : > { %v1631_v60 = vpop.eup %1630  ;;  %1638 = vtanh.f32 %v868_v28  ;;  %v973_v38 = vpack.c.bf16 %v950_v29, %v949_v27  ;;  %v921_v41 = vadd.f32 1.0, %v1621_v32  ;;  %v951_v11 = vmul.f32 %v919_v3, %v695_v33 }
 0x14a   : > { %v834_v46 = vadd.f32 %v802_v31, %v2009_v30  ;;  %v952_v34 = vmul.f32 %v920_v36, %v696_v35  ;;  %v922_v50 = vadd.f32 1.0, %v1625_v0  ;;  %v699_v37 = vmul.f32 0.5, %v1883_v13 }
 0x14b   : > { %1531 = vmatprep.mubr.msk.bf16.mxu1 %vm1020_vm1, %v973_v38  ;;  %v700_v56 = vmul.f32 0.5, %v1899_v39  ;;  %v923_v51 = vadd.f32 1.0, %v1980_v25  ;;  %v924_v24 = vadd.f32 1.0, %v1623_v45  ;;  %v953_v55 = vmul.f32 %v921_v41, %v697_v12 }
 0x14c   : > { %v866_v52 = vmul.f32 0.7978846, %v834_v46  ;;  %v974_v8 = vpack.c.bf16 %v952_v34, %v951_v11  ;;  %v954_v48 = vmul.f32 %v922_v50, %v698_v7  ;;  %v701_v42 = vmul.f32 0.5, %v1933_v16 }
 0x14d   : > { %v1633_v43 = vpop.eup %1632  ;;  %v955_v32 = vmul.f32 %v923_v51, %v699_v37  ;;  %v956_v19 = vmul.f32 %v924_v24, %v700_v56  ;;  %v925_v53 = vadd.f32 1.0, %v1629_v20  ;;  %v702_v58 = vmul.f32 0.5, %v1968_v1 }
 0x14e   : > { %1640 = vtanh.f32 %v866_v52  ;;  %v975_v57 = vpack.c.bf16 %v954_v48, %v953_v55  ;;  %v926_v13 = vadd.f32 1.0, %v1633_v43  ;;  %v703_v25 = vmul.f32 0.5, %v1930_v10 }
 0x14f   : > { %v1635_v49 = vpop.eup %1634  ;;  %1532 = vmatmul.mubr.msk.bf16.gmra.mrb[16].mxu1 %vm1020_vm1, %v974_v8  ;;  %v976_v39 = vpack.c.bf16 %v956_v19, %v955_v32  ;;  %v927_v45 = vadd.f32 1.0, %v1627_v6  ;;  %v957_v54 = vmul.f32 %v925_v53, %v701_v42  ;;  %v704_v16 = vmul.f32 0.5, %v1950_v44 }
 0x150   : > { %v1637_v61 = vpop.eup %1636  ;;  %1535 = vmatprep.mubr.msk.bf16.mxu1 %vm1020_vm1, %v975_v57  ;;  %v958_v0 = vmul.f32 %v926_v13, %v702_v58  ;;  %v928_v14 = vadd.f32 1.0, %v1631_v60  ;;  %v931_v1 = vadd.f32 1.0, %v1635_v49  ;;  %v707_v15 = vmul.f32 0.5, %v1974_v17 }
 0x151   : > { %v959_v2 = vmul.f32 %v927_v45, %v703_v25  ;;  %v708_v59 = vmul.f32 0.5, %v1993_v4  ;;  %v929_v9 = vadd.f32 1.0, %v1637_v61  ;;  %v705_v22 = vmul.f32 0.5, %v1977_v21  ;;  %v2051_v21 = vld [vmem:[%s323_s25] ss:$0 sm:$0xff] }
 0x152   : > { %v977_v18 = vpack.c.bf16 %v958_v0, %v957_v54  ;;  %v960_v47 = vmul.f32 %v928_v14, %v704_v16  ;;  %v963_v6 = vmul.f32 %v931_v1, %v707_v15  ;;  %v706_v26 = vmul.f32 0.5, %v2009_v30 }
 0x153   : > { %v1639_v62 = vpop.eup %1638  ;;  %v961_v17 = vmul.f32 %v929_v9, %v705_v22 }
 0x154   : > { %v978_v5 = vpack.c.bf16 %v960_v47, %v959_v2  ;;  %v932_v10 = vadd.f32 1.0, %v1639_v62 }
 0x156   : > { %v964_v63 = vmul.f32 %v932_v10, %v708_v59 }
 0x157   : > { %1536 = vmatmul.mubr.msk.bf16.gmra.mrb[20].mxu1 %vm1020_vm1, %v976_v39 }
 0x158   : > { %v1641_v20 = vpop.eup %1640  ;;  %1539 = vmatprep.mubr.msk.bf16.mxu1 %vm1020_vm1, %v977_v18  ;;  %v980_v44 = vpack.c.bf16 %v964_v63, %v963_v6 }
 0x159   : > { %v930_v23 = vadd.f32 1.0, %v1641_v20 }
 0x15b   : > { %v962_v40 = vmul.f32 %v930_v23, %v706_v26 }
 0x15d   : > { %v979_v4 = vpack.c.bf16 %v962_v40, %v961_v17 }
 0x15f   : > { %1540 = vmatmul.mubr.msk.bf16.gmra.mrb[24].mxu1 %vm1020_vm1, %v978_v5 }
 0x160   : > { %1543 = vmatprep.mubr.msk.bf16.mxu1 %vm1020_vm1, %v979_v4 }
 0x167   : > { %1544 = vmatmul.mubr.msk.bf16.gmra.mrb[28].mxu1 %vm1020_vm1, %v980_v44 }
 0x1f8   : > { %v1517_v30 = vpop.f32.mrb[0].mxu1 }
 0x1f9   : > { %v1112_v27 = vadd.f32 %v1517_v30, %v2051_v21  ;;  %v1103_v28 = vpop.f32.mrb[1].mxu1 }
 0x1fa   : > { %v1104_v29 = vadd.f32 %v2051_v21, %v1103_v28  ;;  %v1518_v33 = vpop.f32.mrb[2].mxu1 }
 0x1fb   : > { %1232 = vst.msk [vmem:[%s2056_s7 + $0x10] sm:$0xff] %vm467_vm0, %v1112_v27  ;;  %v1115_v3 = vadd.f32 %v1518_v33, %v2051_v21  ;;  %v1106_v31 = vpop.f32.mrb[3].mxu1 }
 0x1fc   : > { %1230 = vst.msk [vmem:[%s2056_s7] sm:$0xff] %vm467_vm0, %v1104_v29  ;;  %v1107_v35 = vadd.f32 %v2051_v21, %v1106_v31 }
 0x1fd   : > { %1233 = vst.msk [vmem:[%s2056_s7 + $0x18] sm:$0xff] %vm467_vm0, %v1115_v3 }
 0x1fe   : > { %1231 = vst.msk [vmem:[%s2056_s7 + $0x8] sm:$0xff] %vm467_vm0, %v1107_v35 }
 0x204   : > { %v1521_v36 = vpop.f32.mrb[4].mxu1 }
 0x205   : > { %v1128_v12 = vadd.f32 %v1521_v36, %v2051_v21  ;;  %v1119_v60 = vpop.f32.mrb[5].mxu1 }
 0x206   : > { %v1120_v38 = vadd.f32 %v2051_v21, %v1119_v60  ;;  %v1522_v7 = vpop.f32.mrb[6].mxu1 }
 0x207   : > { %1236 = vst.msk [vmem:[%s2056_s7 + $0x30] sm:$0xff] %vm467_vm0, %v1128_v12  ;;  %v1131_v41 = vadd.f32 %v1522_v7, %v2051_v21  ;;  %v1122_v46 = vpop.f32.mrb[7].mxu1 }
 0x208   : > { %1234 = vst.msk [vmem:[%s2056_s7 + $0x20] sm:$0xff] %vm467_vm0, %v1120_v38  ;;  %v1123_v11 = vadd.f32 %v2051_v21, %v1122_v46 }
 0x209   : > { %1237 = vst.msk [vmem:[%s2056_s7 + $0x38] sm:$0xff] %vm467_vm0, %v1131_v41 }
 0x20a   : > { %1235 = vst.msk [vmem:[%s2056_s7 + $0x28] sm:$0xff] %vm467_vm0, %v1123_v11 }
 0x20f   : > { %v1525_v34 = vpop.f32.mrb[8].mxu1 }
 0x210   : > { %v1144_v50 = vadd.f32 %v1525_v34, %v2051_v21  ;;  %v1135_v37 = vpop.f32.mrb[9].mxu1 }
 0x211   : > { %v1136_v56 = vadd.f32 %v2051_v21, %v1135_v37  ;;  %v1526_v51 = vpop.f32.mrb[10].mxu1 }
 0x212   : > { %1240 = vst.msk [vmem:[%s2056_s7 + $0x50] sm:$0xff] %vm467_vm0, %v1144_v50  ;;  %v1147_v24 = vadd.f32 %v1526_v51, %v2051_v21  ;;  %v1138_v52 = vpop.f32.mrb[11].mxu1 }
 0x213   : > { %1238 = vst.msk [vmem:[%s2056_s7 + $0x40] sm:$0xff] %vm467_vm0, %v1136_v56  ;;  %v1139_v8 = vadd.f32 %v2051_v21, %v1138_v52 }
 0x214   : > { %1241 = vst.msk [vmem:[%s2056_s7 + $0x58] sm:$0xff] %vm467_vm0, %v1147_v24 }
 0x215   : > { %1239 = vst.msk [vmem:[%s2056_s7 + $0x48] sm:$0xff] %vm467_vm0, %v1139_v8 }
 0x21a   : > { %v1529_v55 = vpop.f32.mrb[12].mxu1 }
 0x21b   : > { %v1160_v48 = vadd.f32 %v1529_v55, %v2051_v21  ;;  %v1151_v43 = vpop.f32.mrb[13].mxu1 }
 0x21c   : > { %v1152_v32 = vadd.f32 %v2051_v21, %v1151_v43  ;;  %v1530_v19 = vpop.f32.mrb[14].mxu1 }
 0x21d   : > { %1244 = vst.msk [vmem:[%s2056_s7 + $0x70] sm:$0xff] %vm467_vm0, %v1160_v48  ;;  %v1163_v42 = vadd.f32 %v1530_v19, %v2051_v21  ;;  %v1154_v53 = vpop.f32.mrb[15].mxu1 }
 0x21e   : > { %1242 = vst.msk [vmem:[%s2056_s7 + $0x60] sm:$0xff] %vm467_vm0, %v1152_v32  ;;  %v1155_v57 = vadd.f32 %v2051_v21, %v1154_v53 }
 0x21f   : > { %1245 = vst.msk [vmem:[%s2056_s7 + $0x78] sm:$0xff] %vm467_vm0, %v1163_v42 }
 0x220   : > { %1243 = vst.msk [vmem:[%s2056_s7 + $0x68] sm:$0xff] %vm467_vm0, %v1155_v57 }
 0x222   : > { %v1533_v58 = vpop.f32.mrb[16].mxu1 }
 0x223   : > { %v1176_v13 = vadd.f32 %v1533_v58, %v2051_v21  ;;  %v1167_v49 = vpop.f32.mrb[17].mxu1 }
 0x224   : > { %v1168_v39 = vadd.f32 %v2051_v21, %v1167_v49  ;;  %v1534_v25 = vpop.f32.mrb[18].mxu1 }
 0x225   : > { %1248 = vst.msk [vmem:[%s2056_s7 + $0x90] sm:$0xff] %vm467_vm0, %v1176_v13  ;;  %v1179_v45 = vadd.f32 %v1534_v25, %v2051_v21  ;;  %v1170_v61 = vpop.f32.mrb[19].mxu1 }
 0x226   : > { %1246 = vst.msk [vmem:[%s2056_s7 + $0x80] sm:$0xff] %vm467_vm0, %v1168_v39  ;;  %v1171_v54 = vadd.f32 %v2051_v21, %v1170_v61 }
 0x227   : > { %1249 = vst.msk [vmem:[%s2056_s7 + $0x98] sm:$0xff] %vm467_vm0, %v1179_v45 }
 0x228   : > { %1247 = vst.msk [vmem:[%s2056_s7 + $0x88] sm:$0xff] %vm467_vm0, %v1171_v54 }
 0x22a   : > { %v1537_v0 = vpop.f32.mrb[20].mxu1 }
 0x22b   : > { %v1192_v16 = vadd.f32 %v1537_v0, %v2051_v21  ;;  %v1183_v14 = vpop.f32.mrb[21].mxu1 }
 0x22c   : > { %v1184_v18 = vadd.f32 %v2051_v21, %v1183_v14  ;;  %v1538_v2 = vpop.f32.mrb[22].mxu1 }
 0x22d   : > { %1252 = vst.msk [vmem:[%s2056_s7 + $0xb0] sm:$0xff] %vm467_vm0, %v1192_v16  ;;  %v1195_v47 = vadd.f32 %v1538_v2, %v2051_v21  ;;  %v1186_v1 = vpop.f32.mrb[23].mxu1 }
 0x22e   : > { %1250 = vst.msk [vmem:[%s2056_s7 + $0xa0] sm:$0xff] %vm467_vm0, %v1184_v18  ;;  %v1187_v62 = vadd.f32 %v2051_v21, %v1186_v1 }
 0x22f   : > { %1253 = vst.msk [vmem:[%s2056_s7 + $0xb8] sm:$0xff] %vm467_vm0, %v1195_v47 }
 0x230   : > { %1251 = vst.msk [vmem:[%s2056_s7 + $0xa8] sm:$0xff] %vm467_vm0, %v1187_v62 }
 0x232   : > { %v1541_v5 = vpop.f32.mrb[24].mxu1 }
 0x233   : > { %v1208_v15 = vadd.f32 %v1541_v5, %v2051_v21  ;;  %v1199_v59 = vpop.f32.mrb[25].mxu1 }
 0x234   : > { %v1200_v10 = vadd.f32 %v2051_v21, %v1199_v59  ;;  %v1542_v6 = vpop.f32.mrb[26].mxu1 }
 0x235   : > { %1256 = vst.msk [vmem:[%s2056_s7 + $0xd0] sm:$0xff] %vm467_vm0, %v1208_v15  ;;  %v1211_v63 = vadd.f32 %v1542_v6, %v2051_v21  ;;  %v1202_v9 = vpop.f32.mrb[27].mxu1 }
 0x236   : > { %1254 = vst.msk [vmem:[%s2056_s7 + $0xc0] sm:$0xff] %vm467_vm0, %v1200_v10  ;;  %v1203_v20 = vadd.f32 %v2051_v21, %v1202_v9 }
 0x237   : > { %1257 = vst.msk [vmem:[%s2056_s7 + $0xd8] sm:$0xff] %vm467_vm0, %v1211_v63 }
 0x238   : > { %1255 = vst.msk [vmem:[%s2056_s7 + $0xc8] sm:$0xff] %vm467_vm0, %v1203_v20 }
 0x23a   : > { %v1545_v44 = vpop.f32.mrb[28].mxu1 }
 0x23b   : > { %v1224_v22 = vadd.f32 %v1545_v44, %v2051_v21  ;;  %v1215_v26 = vpop.f32.mrb[29].mxu1 }
 0x23c   : > { %v1216_v23 = vadd.f32 %v2051_v21, %v1215_v26  ;;  %v1546_v17 = vpop.f32.mrb[30].mxu1 }
 0x23d   : > { %1260 = vst.msk [vmem:[%s2056_s7 + $0xf0] sm:$0xff] %vm467_vm0, %v1224_v22  ;;  %v1227_v40 = vadd.f32 %v1546_v17, %v2051_v21  ;;  %v1218_v4 = vpop.f32.mrb[31].mxu1 }
 0x23e   : > { %1258 = vst.msk [vmem:[%s2056_s7 + $0xe0] sm:$0xff] %vm467_vm0, %v1216_v23  ;;  %v1219_v30 = vadd.f32 %v2051_v21, %v1218_v4 }
 0x23f   : > { %1261 = vst.msk [vmem:[%s2056_s7 + $0xf8] sm:$0xff] %vm467_vm0, %v1227_v40 }
 0x240   : > { %1259 = vst.msk [vmem:[%s2056_s7 + $0xe8] sm:$0xff] %vm467_vm0, %v1219_v30 }
 0x241 PF: > { %s22_s26 = sadd.s32 1, %s1662_s26  }
 0x242   : > { %p19_p13 = scmp.ge.s32.totalorder %s22_s26, 7  }
 0x244   :  { %21 = sbr.rel (!%p19_p13) target bundleno = 16 (0x10), region = 82 }

</bundles_post_ra>
